<compile_context>
chip_gen: v6e
topology: v6e:2x2x1
jax: 0.10.0
libtpu: 0.0.40
codegen_flags: <defaults>
</compile_context>

<pallas_src>
import functools

import jax
import jax.numpy as jnp
from jax.experimental import pallas as pl
from jax.experimental.pallas import tpu as pltpu

_LANE = 128     # lane width: feature dims padded to multiples of this
_SUBLANE = 8    # f32 sublane height: row tiles are multiples of this


def _round_up(n, m):
    return -(-n // m) * m


def _mlp_kernel(x_ref, *refs, num_layers: int, matmul_dtype):
    """Fused MLP over one activation row tile.

    x_ref : (tile_m, D0p)                       activation row tile (f32)
    refs  : w0, b0, ..., w_{L-1}, b_{L-1}, o_ref
            w_i : (D_ip, D_{i+1}p)  matmul_dtype (bf16), VMEM-resident, single-buffered
            b_i : (1,   D_{i+1}p)   f32
            o_ref : (tile_m, D_Lp)
    """
    o_ref = refs[-1]
    wb = refs[:-1]

    y = x_ref[...].astype(jnp.float32)
    for i in range(num_layers):
        w = wb[2 * i][...]
        b = wb[2 * i + 1][...]
        # bf16 MXU matmul with f32 accumulate; bias + ReLU epilogue stay in f32.
        y = jnp.dot(y.astype(matmul_dtype), w, preferred_element_type=jnp.float32) + b
        if i < num_layers - 1:
            y = jnp.maximum(y, 0.0)
    o_ref[...] = y.astype(o_ref.dtype)


def prepare_mlp_params(params, matmul_dtype=jnp.bfloat16):
    """One-time (off the hot path) lane-padding + matmul-dtype cast of all weights/biases.

    Zero padding is exact: padded weight rows/cols and padded bias lanes are 0, so padded
    activation lanes stay 0 through ReLU and contribute nothing downstream.
    """
    dims = [params[0][0].shape[0]] + [w.shape[1] for (w, _) in params]
    pdims = [_round_up(d, _LANE) for d in dims]
    padded = []
    for li, (w, b) in enumerate(params):
        wp = jnp.pad(
            w, ((0, pdims[li] - w.shape[0]), (0, pdims[li + 1] - w.shape[1]))
        ).astype(matmul_dtype)
        bp = jnp.pad(b, ((0, 0), (0, pdims[li + 1] - b.shape[1]))).astype(jnp.float32)
        padded.append((wp, bp))
    return {"padded": padded, "dims": dims, "pdims": pdims, "matmul_dtype": matmul_dtype}


def _choose_tile_m(M, requested):
    """Row-tile selection: big tiles to amortize per-step overhead, but keep >=2 grid
    steps when M permits so the parallel axis can use both v7x TensorCores, and round
    to sublane multiples with minimal row padding."""
    requested = max(_SUBLANE, (requested // _SUBLANE) * _SUBLANE)
    g = max(1, -(-M // requested))
    if M > _SUBLANE:
        g = max(g, 2)
    t = -(-M // g)
    return _round_up(t, _SUBLANE)


def mlp_forward(x, prepared, *, tile_m=512):
    """Pallas fused-MLP forward.

    x: [..., input_dim]; prepared: output of prepare_mlp_params().
    ReLU after every layer except the last (matches torch MLP with act='relu').
    """
    padded = prepared["padded"]
    dims, pdims = prepared["dims"], prepared["pdims"]
    matmul_dtype = prepared["matmul_dtype"]
    num_layers = len(padded)
    d_in, d_out = dims[0], dims[-1]

    lead_shape = x.shape[:-1]
    x2d = x.reshape(-1, d_in)
    M = x2d.shape[0]

    tile_m = _choose_tile_m(M, tile_m)
    grid = -(-M // tile_m)
    Mp = grid * tile_m

    # Pad activations: rows to tile_m multiple, features to lane multiple.
    x2d = jnp.pad(x2d, ((0, Mp - M), (0, pdims[0] - d_in)))

    flat_inputs = [x2d]
    in_specs = [pl.BlockSpec((tile_m, pdims[0]), lambda i: (i, 0))]
    for wp, bp in padded:
        flat_inputs += [wp, bp]
        # Grid-invariant blocks: keep weights/biases VMEM-resident with a single buffer.
        in_specs.append(pl.BlockSpec(wp.shape, lambda i: (0, 0), pipeline_mode=pl.Buffered(1)))
        in_specs.append(pl.BlockSpec(bp.shape, lambda i: (0, 0), pipeline_mode=pl.Buffered(1)))

    # VMEM budget: weights (single-buffered) + double-buffered activation/output tiles
    # + f32 intermediate + slack, clamped to ~75% of physical per-core VMEM.
    weight_bytes = sum(w.size * w.dtype.itemsize + b.size * b.dtype.itemsize for w, b in padded)
    act_bytes = 2 * tile_m * pdims[0] * x2d.dtype.itemsize
    out_bytes = 2 * tile_m * pdims[-1] * x.dtype.itemsize
    interm_bytes = tile_m * max(pdims) * 4
    needed = weight_bytes + act_bytes + out_bytes + interm_bytes + (4 << 20)
    try:
        vmem_cap = pltpu.get_tpu_info().vmem_capacity_bytes
    except Exception:
        vmem_cap = 64 << 20  # conservative fallback (v7x per-TC VMEM)
    budget = int(0.75 * vmem_cap)
    vmem_limit = int(min(budget, max(2 * needed, 32 << 20)))
    # TODO(synk): if `needed` exceeds `budget` (hit ~2x sooner on v7x's 64 MiB VMEM than on
    # v5e/v6e), fall back to a K/N-tiled grid with a pl.when-initialized f32 VMEM accumulator
    # instead of keeping whole weights resident.

    kernel = functools.partial(_mlp_kernel, num_layers=num_layers, matmul_dtype=matmul_dtype)
    out = pl.pallas_call(
        kernel,
        out_shape=jax.ShapeDtypeStruct((Mp, pdims[-1]), x.dtype),
        grid_spec=pltpu.PrefetchScalarGridSpec(
            num_scalar_prefetch=0,
            grid=(grid,),
            in_specs=in_specs,
            out_specs=pl.BlockSpec((tile_m, pdims[-1]), lambda i: (i, 0)),
        ),
        compiler_params=pltpu.CompilerParams(
            dimension_semantics=("parallel",),
            vmem_limit_bytes=vmem_limit,
        ),
    )(*flat_inputs)

    # Lane-dense padded store inside the kernel (unmasked vst); trim once here.
    out = out[:M, :d_out]
    return out.reshape(*lead_shape, d_out)


def init_mlp_params(key, input_dim, hidden_dim, output_dim, num_layers, dtype=jnp.float32):
    """Deterministic (PRNGKey-seeded) init matching nn.Linear shapes."""
    h = [hidden_dim] * (num_layers - 1)
    dims_in = [input_dim] + h
    dims_out = h + [output_dim]
    params = []
    for n, k in zip(dims_in, dims_out):
        key, kw, kb = jax.random.split(key, 3)
        bound = 1.0 / (n ** 0.5)  # torch default Linear init range
        w = jax.random.uniform(kw, (n, k), dtype, minval=-bound, maxval=bound)
        b = jax.random.uniform(kb, (1, k), dtype, minval=-bound, maxval=bound)
        params.append((w, b))
    return params


if __name__ == "__main__":
    # Small shapes consistent with RT-DETR usage (bbox-head MLP over queries):
    # x: [batch=2, queries=8, input_dim=32], hidden_dim=64, output_dim=4, num_layers=3.
    key = jax.random.PRNGKey(0)
    kx, kp = jax.random.split(key)

    batch, queries, input_dim = 2, 8, 32
    hidden_dim, output_dim, num_layers = 64, 4, 3

    x = jax.random.normal(kx, (batch, queries, input_dim), jnp.float32)
    params = init_mlp_params(kp, input_dim, hidden_dim, output_dim, num_layers)

    # Pad + bf16-cast the weights ONCE, off the per-call path.
    prepared = prepare_mlp_params(params, matmul_dtype=jnp.bfloat16)

    out = mlp_forward(x, prepared)
    out = jax.block_until_ready(out)

    # Reference 1: mimic the kernel's numerics (bf16 matmul, f32 accumulate/epilogue).
    ref = x.reshape(-1, input_dim).astype(jnp.float32)
    for i, (w, b) in enumerate(params):
        ref = jnp.dot(ref.astype(jnp.bfloat16), w.astype(jnp.bfloat16),
                      preferred_element_type=jnp.float32) + b[0]
        if i < num_layers - 1:
            ref = jnp.maximum(ref, 0.0)
    ref = ref.reshape(batch, queries, output_dim)

    # Reference 2: pure-f32 torch-equivalent forward (loose tolerance for bf16 matmuls).
    ref32 = x
    for i, (w, b) in enumerate(params):
        ref32 = ref32 @ w + b[0]
        if i < num_layers - 1:
            ref32 = jnp.maximum(ref32, 0.0)

    assert out.shape == (batch, queries, output_dim)
    assert jnp.allclose(out, ref, atol=1e-3, rtol=1e-3), float(jnp.max(jnp.abs(out - ref)))
    assert jnp.allclose(out, ref32, atol=5e-2, rtol=5e-2), float(jnp.max(jnp.abs(out - ref32)))

    print("KERNEL_OK")
</pallas_src>

<mosaic_0001>
module attributes {stable_mosaic.version = 11 : i64} {
  func.func @_mlp_kernel(%arg0: i32, %arg1: memref<8x128xf32, #tpu.memory_space<vmem>>, %arg2: memref<128x128xbf16, #tpu.memory_space<vmem>>, %arg3: memref<1x128xf32, #tpu.memory_space<vmem>>, %arg4: memref<128x128xbf16, #tpu.memory_space<vmem>>, %arg5: memref<1x128xf32, #tpu.memory_space<vmem>>, %arg6: memref<128x128xbf16, #tpu.memory_space<vmem>>, %arg7: memref<1x128xf32, #tpu.memory_space<vmem>>, %arg8: memref<8x128xf32, #tpu.memory_space<vmem>>) attributes {dimension_semantics = [#tpu.dimension_semantics<parallel>], iteration_bounds = array<i64: 2>, scalar_prefetch = 0 : i64, scratch_operands = 0 : i64, tpu.core_type = #tpu.core_type<tc>, window_params = [{transform_indices = @transform_0, window_bounds = array<i64: 8, 128>}, {pipeline_mode = #tpu.pipeline_mode<synchronous>, transform_indices = @transform_1, window_bounds = array<i64: 128, 128>}, {pipeline_mode = #tpu.pipeline_mode<synchronous>, transform_indices = @transform_2, window_bounds = array<i64: 1, 128>}, {pipeline_mode = #tpu.pipeline_mode<synchronous>, transform_indices = @transform_3, window_bounds = array<i64: 128, 128>}, {pipeline_mode = #tpu.pipeline_mode<synchronous>, transform_indices = @transform_4, window_bounds = array<i64: 1, 128>}, {pipeline_mode = #tpu.pipeline_mode<synchronous>, transform_indices = @transform_5, window_bounds = array<i64: 128, 128>}, {pipeline_mode = #tpu.pipeline_mode<synchronous>, transform_indices = @transform_6, window_bounds = array<i64: 1, 128>}, {transform_indices = @transform_7, window_bounds = array<i64: 8, 128>}]} {
    %c0 = arith.constant 0 : index
    %c0_0 = arith.constant 0 : index
    %0 = vector.load %arg1[%c0, %c0_0] : memref<8x128xf32, #tpu.memory_space<vmem>>, vector<8x128xf32>
    %c0_1 = arith.constant 0 : index
    %c0_2 = arith.constant 0 : index
    %1 = vector.load %arg2[%c0_1, %c0_2] : memref<128x128xbf16, #tpu.memory_space<vmem>>, vector<128x128xbf16>
    %c0_3 = arith.constant 0 : index
    %c0_4 = arith.constant 0 : index
    %2 = vector.load %arg3[%c0_3, %c0_4] : memref<1x128xf32, #tpu.memory_space<vmem>>, vector<1x128xf32>
    %3 = arith.truncf %0 : vector<8x128xf32> to vector<8x128xbf16>
    %cst = arith.constant dense<0.000000e+00> : vector<8x128xf32>
    %4 = tpu.matmul %3, %1, %cst {dimension_numbers = #tpu.dot_dimension_numbers<[1], [0], [0], [1], [0, 0, 1, 1], [], []>} : vector<8x128xbf16>, vector<128x128xbf16>, vector<8x128xf32> -> vector<8x128xf32>
    %5 = vector.broadcast %2 : vector<1x128xf32> to vector<8x128xf32>
    %6 = arith.addf %4, %5 : vector<8x128xf32>
    %cst_5 = arith.constant 0.000000e+00 : f32
    %7 = vector.broadcast %cst_5 : f32 to vector<8x128xf32>
    %8 = arith.maximumf %6, %7 : vector<8x128xf32>
    %c0_6 = arith.constant 0 : index
    %c0_7 = arith.constant 0 : index
    %9 = vector.load %arg4[%c0_6, %c0_7] : memref<128x128xbf16, #tpu.memory_space<vmem>>, vector<128x128xbf16>
    %c0_8 = arith.constant 0 : index
    %c0_9 = arith.constant 0 : index
    %10 = vector.load %arg5[%c0_8, %c0_9] : memref<1x128xf32, #tpu.memory_space<vmem>>, vector<1x128xf32>
    %11 = arith.truncf %8 : vector<8x128xf32> to vector<8x128xbf16>
    %cst_10 = arith.constant dense<0.000000e+00> : vector<8x128xf32>
    %12 = tpu.matmul %11, %9, %cst_10 {dimension_numbers = #tpu.dot_dimension_numbers<[1], [0], [0], [1], [0, 0, 1, 1], [], []>} : vector<8x128xbf16>, vector<128x128xbf16>, vector<8x128xf32> -> vector<8x128xf32>
    %13 = vector.broadcast %10 : vector<1x128xf32> to vector<8x128xf32>
    %14 = arith.addf %12, %13 : vector<8x128xf32>
    %cst_11 = arith.constant 0.000000e+00 : f32
    %15 = vector.broadcast %cst_11 : f32 to vector<8x128xf32>
    %16 = arith.maximumf %14, %15 : vector<8x128xf32>
    %c0_12 = arith.constant 0 : index
    %c0_13 = arith.constant 0 : index
    %17 = vector.load %arg6[%c0_12, %c0_13] : memref<128x128xbf16, #tpu.memory_space<vmem>>, vector<128x128xbf16>
    %c0_14 = arith.constant 0 : index
    %c0_15 = arith.constant 0 : index
    %18 = vector.load %arg7[%c0_14, %c0_15] : memref<1x128xf32, #tpu.memory_space<vmem>>, vector<1x128xf32>
    %19 = arith.truncf %16 : vector<8x128xf32> to vector<8x128xbf16>
    %cst_16 = arith.constant dense<0.000000e+00> : vector<8x128xf32>
    %20 = tpu.matmul %19, %17, %cst_16 {dimension_numbers = #tpu.dot_dimension_numbers<[1], [0], [0], [1], [0, 0, 1, 1], [], []>} : vector<8x128xbf16>, vector<128x128xbf16>, vector<8x128xf32> -> vector<8x128xf32>
    %21 = vector.broadcast %18 : vector<1x128xf32> to vector<8x128xf32>
    %22 = arith.addf %20, %21 : vector<8x128xf32>
    %c0_17 = arith.constant 0 : index
    %c0_18 = arith.constant 0 : index
    %23 = vector.load %arg8[%c0_17, %c0_18] : memref<8x128xf32, #tpu.memory_space<vmem>>, vector<8x128xf32>
    tpu.vector_store %arg8[%c0_17, %c0_18], %22 {strides = array<i32>} : memref<8x128xf32, #tpu.memory_space<vmem>>, vector<8x128xf32>,
    return
  }
  func.func @transform_0(%arg0: i32) -> (i32, i32) {
    %c0_i32 = arith.constant 0 : i32
    %c0_i32_0 = arith.constant 0 : i32
    return %arg0, %c0_i32 : i32, i32
  }
  func.func @transform_1(%arg0: i32) -> (i32, i32) {
    %c0_i32 = arith.constant 0 : i32
    %c0_i32_0 = arith.constant 0 : i32
    %c0_i32_1 = arith.constant 0 : i32
    return %c0_i32, %c0_i32_0 : i32, i32
  }
  func.func @transform_2(%arg0: i32) -> (i32, i32) {
    %c0_i32 = arith.constant 0 : i32
    %c0_i32_0 = arith.constant 0 : i32
    %c0_i32_1 = arith.constant 0 : i32
    return %c0_i32, %c0_i32_0 : i32, i32
  }
  func.func @transform_3(%arg0: i32) -> (i32, i32) {
    %c0_i32 = arith.constant 0 : i32
    %c0_i32_0 = arith.constant 0 : i32
    %c0_i32_1 = arith.constant 0 : i32
    return %c0_i32, %c0_i32_0 : i32, i32
  }
  func.func @transform_4(%arg0: i32) -> (i32, i32) {
    %c0_i32 = arith.constant 0 : i32
    %c0_i32_0 = arith.constant 0 : i32
    %c0_i32_1 = arith.constant 0 : i32
    return %c0_i32, %c0_i32_0 : i32, i32
  }
  func.func @transform_5(%arg0: i32) -> (i32, i32) {
    %c0_i32 = arith.constant 0 : i32
    %c0_i32_0 = arith.constant 0 : i32
    %c0_i32_1 = arith.constant 0 : i32
    return %c0_i32, %c0_i32_0 : i32, i32
  }
  func.func @transform_6(%arg0: i32) -> (i32, i32) {
    %c0_i32 = arith.constant 0 : i32
    %c0_i32_0 = arith.constant 0 : i32
    %c0_i32_1 = arith.constant 0 : i32
    return %c0_i32, %c0_i32_0 : i32, i32
  }
  func.func @transform_7(%arg0: i32) -> (i32, i32) {
    %c0_i32 = arith.constant 0 : i32
    %c0_i32_0 = arith.constant 0 : i32
    return %arg0, %c0_i32 : i32, i32
  }
}

</mosaic_0001>

<bundles_post_ra>
// kernel: tpu_custom_call.1
= control target key start
LH: loop header
LB: loop body
LE: loop exit
PB: predicated region body
PF: predicated region fallthrough
CT: control target
= control target key end

     0   :  { %s1493_s0 = inlined_call_operand.hbm [shape: f32[16,128], index: 0, kind: input, shape index: {}]   ;;  %s1494_s1 = inlined_call_operand.hbm [shape: bf16[128,128], index: 1, kind: input, shape index: {}]   ;;  %s1495_s2 = inlined_call_operand.vmem [shape: f32[1,128], index: 2, kind: input, shape index: {}]   ;;  %s1496_s3 = inlined_call_operand.hbm [shape: bf16[128,128], index: 3, kind: input, shape index: {}]   ;;  %s1497_s4 = inlined_call_operand.vmem [shape: f32[1,128], index: 4, kind: input, shape index: {}]   ;;  %s1498_s5 = inlined_call_operand.hbm [shape: bf16[128,128], index: 5, kind: input, shape index: {}]   ;;  %s1499_s6 = inlined_call_operand.vmem [shape: f32[1,128], index: 6, kind: input, shape index: {}]   ;;  %s1500_s7 = inlined_call_operand.hbm [shape: f32[16,128], index: 7, kind: output, shape index: {}]  }
   0x1   :  { %1505 = sst [smem:[#allocation15_spill]] %s1494_s1 }
   0x2   :  { %1506 = sst [smem:[#allocation16_spill]] %s1496_s3 }
   0x3   :  { %12 = vsyncpa [#allocation3], 0 }
   0x4   :  { %14 = vsyncpa [#allocation3 + $0x1], 0 }
   0x5   :  { %15 = vsyncpa [#allocation6], 0 }
   0x6   :  { %16 = vsyncpa [#allocation9], 0 }
   0x7   :  { %17 = vsyncpa [#allocation4], 0 }
   0x8   :  { %19 = vsyncpa [#allocation4 + $0x1], 0  ;;  %s1258_s24 = smov 0   ;;  %s1260_s25 = smov 0  }
   0x9   :  { %s1262_s26 = smov 0   ;;  %s1264_s27 = smov 0  }
   0xa LB: > { %s1279_s28 = sadd.s32 4294967295, %s1207_s27   ;;  %s792_s29 = sadd.s32 4294967294, %s1207_s27   ;;  %s1207_s27 = sphi %s1264_s27, %s1528_s27   ;;  %s1203_s26 = sphi %s1262_s26, %s1527_s26   ;;  %s1199_s25 = sphi %s1260_s25, %s1526_s25   ;;  %s1195_s24 = sphi %s1258_s24, %s1525_s24  }
   0xb   : > { %p45_p0 = scmp.ne.s32.totalorder %s1199_s25, %s1195_s24  ;;  %p1501_p1 = scmp.eq.s32.totalorder %s1279_s28, 0 }
   0xc   : > { %p201_p3 = scmp.eq.s32.totalorder %s792_s29, 1  ;;  %p793_p5 = scmp.ge.s32.totalorder %s1207_s27, 1 }
   0xd   : > { %p1288_p4 = por %p1501_p1, %p45_p0  ;;  %p208_p7 = scmp.lt.s32.totalorder %s1207_s27, 3 }
   0xe   : > { %p1293_p6 = por %p201_p3, %p45_p0  ;;  %s1209_s10 = smov [#allocation5]  }
   0xf   : > { %s1507_s30 = scalar_select %p1288_p4, 1, 0 }
  0x10   : > { %s1508_s8 = scalar_select %p1293_p6, 1, 0 }
  0x11   : > { %p1298_p8 = pnand %p793_p5, %p208_p7  ;;  %s220_s11 = sshll.u32 %s1209_s10, 4  ;;  %s221_s11 = int_to_ptr.vmem [resolvable:$true] %s220_s11 }
  0x12   : > { %s1210_s13 = smov [#allocation7]   ;;  %s1211_s15 = smov [#allocation8]  }
  0x13   : > { %s1509_s9 = scalar_select %p1298_p8, 1, 0 }
  0x14   : > { %p940_p9 = pneg %p1298_p8  ;;  %s236_s14 = sshll.u32 %s1210_s13, 4  ;;  %s237_s14 = int_to_ptr.vmem [resolvable:$true] %s236_s14 }
  0x15   : > { %s252_s16 = sshll.u32 %s1211_s15, 4  ;;  %s1040_s17 = scalar_lea.vmem %s221_s11, 1024  ;;  %s253_s16 = int_to_ptr.vmem [resolvable:$true] %s252_s16 }
  0x16   : > { %p1307_p11 = pnand %p940_p9, %p1501_p1  ;;  %p1041_p13 = scmp.ne.s32.totalorder %s221_s11, %s1040_s17 }
  0x17   : > { %p1048_p5 = scmp.lt.s32.totalorder %s221_s11, %s221_s11  ;;  %p1049_p7 = scmp.lt.s32.totalorder %s1040_s17, %s1040_s17 }
  0x18   : > { %p1031_p12 = pneg %p1307_p11 }
  0x19   : > { %p1050_p9 = por %p1049_p7, %p1048_p5 }
  0x1a   : > { %p1043_p0 = pnand %p1041_p13, %p1031_p12 }
  0x1c   : > { %p1044_p3 = pneg %p1043_p0 }
  0x1e   : > { %p1051_p10 = pnand %p1050_p9, %p1044_p3 }
  0x20   : > { %1054 = shalt.err (!%p1051_p10)
}
  0x21   : > { %s1212_s18 = smov 64   ;;  %s1213_s19 = smov 4  }
  0x22   : > { %s1511_s1 = sld [smem:[#allocation15_spill]]  ;;  %s1066_s22 = scalar_lea.vmem %s237_s14, 1024 }
  0x23   : > { %p1067_p1 = scmp.ne.s32.totalorder %s237_s14, %s1066_s22  ;;  %p1074_p2 = scmp.lt.s32.totalorder %s237_s14, %s237_s14 }
  0x24   : > { %p1075_p6 = scmp.lt.s32.totalorder %s1066_s22, %s1066_s22 }
  0x25   : > { %p1069_p13 = pnand %p1067_p1, %p1031_p12 }
  0x26   : > { %p1076_p5 = por %p1075_p6, %p1074_p2 }
  0x27   : > { %p1070_p0 = pneg %p1069_p13 }
  0x28   : > { %943 = dma.hbm_to_vmem [thread:$0]  (!%p1307_p11), %s1511_s1, 1024, %s221_s11, [#allocation6], %s1212_s18, %s1212_s18, %s1213_s19  }
  0x29   : > { %p1077_p3 = pnand %p1076_p5, %p1070_p0 }
  0x2b   : > { %1080 = shalt.err (!%p1077_p3)
}
  0x2c   : > { %s1512_s3 = sld [smem:[#allocation16_spill]]  ;;  %s1092_s10 = scalar_lea.vmem %s253_s16, 1024 }
  0x2d   : > { %p1093_p10 = scmp.ne.s32.totalorder %s253_s16, %s1092_s10  ;;  %p1100_p9 = scmp.lt.s32.totalorder %s253_s16, %s253_s16 }
  0x2e   : > { %p1101_p13 = scmp.lt.s32.totalorder %s1092_s10, %s1092_s10 }
  0x2f   : > { %p1095_p7 = pnand %p1093_p10, %p1031_p12 }
  0x30   : > { %p1102_p4 = por %p1101_p13, %p1100_p9 }
  0x31   : > { %p1096_p1 = pneg %p1095_p7 }
  0x32   : > { %946 = dma.hbm_to_vmem [thread:$0]  (!%p1307_p11), %s1512_s3, 1024, %s237_s14, [#allocation6], %s1212_s18, %s1212_s18, %s1213_s19  }
  0x33   : > { %p1103_p2 = pnand %p1102_p4, %p1096_p1 }
  0x35   : > { %1106 = shalt.err (!%p1103_p2)
}
  0x36   : > { %949 = dma.hbm_to_vmem [thread:$0]  (!%p1307_p11), %s1498_s5, 1024, %s253_s16, [#allocation9], %s1212_s18, %s1212_s18, %s1213_s19  }
  0x37   : > { %s1338_s14 = sadd.s32 1, %s1207_s27   ;;  %s32_s12 = sadd.s32 1, %s1203_s26 }
  0x38   : > { %s29_s15 = ssub.s32 %s1207_s27, %s1338_s14  ;;  %p39_p6 = scmp.ne.s32.totalorder %s1203_s26, %s1199_s25 }
  0x39   : > { %p30_p4 = scmp.eq.s32.totalorder %s29_s15, 0  ;;  %p40_p12 = scmp.eq.s32.totalorder %s1207_s27, 0 }
  0x3a   : > { %p961_p0 = scmp.lt.s32.totalorder %s1207_s27, 2  ;;  %p1513_p3 = scmp.eq.s32.totalorder %s1279_s28, 1 }
  0x3b   : > { %s1348_s17 = scalar_select %p30_p4, %s1203_s26, %s32_s12  }
  0x3c   : > { %p41_p5 = por %p40_p12, %p39_p6  ;;  %p1352_p10 = por %p1513_p3, %p39_p6 }
  0x3d   : > { %s269_s21 = sand.u32 1, %s1203_s26   ;;  %s799_s22 = sshll.u32 %s1207_s27, 7 }
  0x3e   : > { %s1514_s20 = scalar_select %p1352_p10, 1, 0 }
  0x3f   : > { %s798_s16 = sshll.u32 %s269_s21, 3  ;;  %s1361_s23 = scalar_lea.hbm %s1493_s0, %s799_s22 }
  0x40   : > { %s273_s29 = scalar_lea.vmem [#allocation2], %s798_s16  ;;  %p1363_p11 = pnand %p961_p0, %p41_p5 }
  0x41   : > { %s280_s10 = sshll.u32 %s273_s29, 4  ;;  %s270_s13 = scalar_lea.sflag [#allocation3], %s269_s21  ;;  %s281_s10 = int_to_ptr.vmem [resolvable:$true] %s280_s10 }
  0x42   : > { %s1107_s15 = scalar_lea.hbm %s1361_s23, 128  ;;  %p1109_p1 = pneg %p1363_p11 }
  0x43   : > { %p1108_p7 = scmp.ne.s32.totalorder %s1361_s23, %s1107_s15  ;;  %s1112_s18 = scalar_lea.hbm %s1493_s0, 256 }
  0x44   : > { %p1113_p2 = scmp.lt.s32.totalorder %s1361_s23, %s1493_s0  ;;  %p1114_p4 = scmp.lt.s32.totalorder %s1112_s18, %s1107_s15 }
  0x45   : > { %p1110_p9 = pnand %p1109_p1, %p1108_p7 }
  0x46   : > { %p1115_p6 = por %p1114_p4, %p1113_p2 }
  0x47   : > { %p1111_p13 = pneg %p1110_p9 }
  0x49   : > { %p1116_p12 = pnand %p1115_p6, %p1111_p13 }
  0x4b   : > { %1119 = shalt.err (!%p1116_p12)
}
  0x4c   : > { %s1120_s29 = scalar_lea.vmem %s281_s10, 128  ;;  %s1214_s21 = smov [#allocation2]  }
  0x4d   : > { %p1121_p0 = scmp.ne.s32.totalorder %s281_s10, %s1120_s29  ;;  %s1125_s1 = sshll.u32 %s1214_s21, 4  ;;  %s1126_s1 = int_to_ptr.vmem [resolvable:$false] %s1125_s1 }
  0x4e   : > { %s1127_s3 = scalar_lea.vmem %s1126_s1, 256  ;;  %p1128_p7 = scmp.lt.s32.totalorder %s281_s10, %s1126_s1 }
  0x4f   : > { %p1123_p5 = pnand %p1121_p0, %p1109_p1  ;;  %p1129_p9 = scmp.lt.s32.totalorder %s1127_s3, %s1120_s29 }
  0x51   : > { %p1124_p3 = pneg %p1123_p5  ;;  %p1130_p10 = por %p1129_p9, %p1128_p7 }
  0x53   : > { %p1131_p8 = pnand %p1130_p10, %p1124_p3 }
  0x55   : > { %1134 = shalt.err (!%p1131_p8)
}
  0x56   : > { %953 = dma.hbm_to_vmem [thread:$0]  (!%p1363_p11), %s1361_s23, 128, %s281_s10, %s270_s13  }
  0x57   : > { %p1516_p13 = scmp.ne.s32.totalorder %s1509_s9, 0 }
  0x58   : > { %s1384_s15 = sand.u32 (!%p1516_p13), 1, %s1199_s25   ;;  %p1517_p8 = scmp.ne.s32.totalorder (!%p1516_p13), %s1507_s30, 0 }
  0x59   : > { %289 = sbr.rel (%p1516_p13) target bundleno = 742 (0x2e6), region = 48  ;;  %s801_s12 = sshll.u32 (!%p1516_p13), %s1384_s15, 3 }
  0x5a   : > { %s292_s1 = scalar_lea.sflag (!%p1516_p13), [#allocation3], %s1384_s15  ;;  %s1390_s3 = scalar_lea.vmem (!%p1516_p13), [#allocation2], %s801_s12 }
  0x5e   : > { %1178 = dma.done.wait (%p1517_p8), %s292_s1, 128  }
  0x5f   : > { %1180 = vsyncadd (%p1517_p8), %s292_s1, 4294967168  ;;  %p1518_p10 = scmp.eq.s32.totalorder %s1279_s28, 0 }
  0x61   : > { %1182 = dma.done.wait (%p1518_p10), [#allocation6], 2048   ;;  %p1519_p11 = pmov %p1518_p10 }
  0x62   : > { %p1520_p1 = pmov %p1518_p10 }
  0x63   : > { %1184 = vsyncadd (%p1519_p11), [#allocation6], 4294965248 }
  0x64   : > { %1186 = dma.done.wait (%p1520_p1), [#allocation9], 1024   ;;  %p1521_p2 = pmov %p1520_p1 }
  0x65   : > { %v1215_v0 = vmov 0.0   ;;  %vm1216_vm0 = vmmov 0   ;;  %v1005_v1 = vld [vmem:[#allocation5 + $0x38] sm:$0xff]   ;;  %v1006_v2 = vld [vmem:[#allocation5 + $0x30] sm:$0xff]   ;;  %v1007_v3 = vld [vmem:[#allocation5 + $0x28] sm:$0xff]   ;;  %s834_s22 = sshll.u32 %s1279_s28, 7 }
  0x66   : > { %1188 = vsyncadd (%p1521_p2), [#allocation9], 4294966272  ;;  %864 = vmatprep.subr.bf16.mxu0 %v1215_v0  ;;  %880 = vmatprep.mubr.msk.bf16.mxu0 %vm1216_vm0, %v1215_v0  ;;  %v1013_v4 = vld [vmem:[#allocation7 + $0x38] sm:$0xff]   ;;  %v1008_v5 = vld [vmem:[#allocation5 + $0x20] sm:$0xff]   ;;  %s337_s18 = scalar_lea.vmem [#allocation10], %s801_s12  ;;  %s1450_s21 = scalar_lea.hbm %s1500_s7, %s834_s22 }
  0x67   : > { %884 = vmatprep.subr.bf16.mxu1 %v1215_v0  ;;  %900 = vmatprep.mubr.msk.bf16.mxu1 %vm1216_vm0, %v1215_v0  ;;  %v1014_v6 = vld [vmem:[#allocation7 + $0x30] sm:$0xff]   ;;  %v1009_v7 = vld [vmem:[#allocation5 + $0x18] sm:$0xff]   ;;  %v1015_v8 = vld [vmem:[#allocation7 + $0x28] sm:$0xff]   ;;  %s693_s19 = sshll.u32 %s337_s18, 4  ;;  %s680_s1 = scalar_lea.sflag [#allocation4], %s1384_s15  ;;  %s1452_s19 = int_to_ptr.vmem [resolvable:$true] %s693_s19 }
  0x68   : > { %865 = vmatpush3.bf16.msra.mxu0 %v1005_v1  ;;  %885 = vmatpush3.bf16.msra.mxu1 %v1013_v4  ;;  %v1010_v9 = vld [vmem:[#allocation5 + $0x10] sm:$0xff]   ;;  %v1016_v10 = vld [vmem:[#allocation7 + $0x20] sm:$0xff]   ;;  %v1011_v11 = vld [vmem:[#allocation5 + $0x8] sm:$0xff]   ;;  %s1135_s28 = scalar_lea.vmem %s1452_s19, 128  ;;  %p1522_p6 = scmp.ne.s32.totalorder %s1514_s20, 0 }
  0x69   : > { %866 = vmatprep.subr.bf16.mxu0 %v1215_v0  ;;  %886 = vmatprep.subr.bf16.mxu1 %v1215_v0  ;;  %v1017_v12 = vld [vmem:[#allocation7 + $0x18] sm:$0xff]   ;;  %v1012_v13 = vld [vmem:[#allocation5] sm:$0xff]   ;;  %v1018_v15 = vld [vmem:[#allocation7 + $0x10] sm:$0xff]   ;;  %p1136_p4 = scmp.ne.s32.totalorder %s1452_s19, %s1135_s28  ;;  %s1217_s12 = smov [#allocation10]  }
  0x6a   : > { %v339_v14 = vld [vmem:[%s1390_s3] sm:$0xff]  ;;  %v1019_v17 = vld [vmem:[#allocation7 + $0x8] sm:$0xff]   ;;  %v1020_v18 = vld [vmem:[#allocation7] sm:$0xff]   ;;  %s1139_s3 = sshll.u32 %s1217_s12, 4  ;;  %s1140_s3 = int_to_ptr.vmem [resolvable:$false] %s1139_s3 }
  0x6b   : > { %v357_v16 = vpack.c.bf16 %v339_v14, %v339_v14  ;;  %v1021_v19 = vld [vmem:[#allocation8 + $0x38] sm:$0xff]   ;;  %v1022_v20 = vld [vmem:[#allocation8 + $0x30] sm:$0xff]   ;;  %v1023_v21 = vld [vmem:[#allocation8 + $0x28] sm:$0xff]   ;;  %p1137_p12 = pnand %p1136_p4, %p1522_p6  ;;  %s1141_s30 = scalar_lea.vmem %s1140_s3, 256 }
  0x6c   : > { %867 = vmatpush3.bf16.msra.mxu0 %v1006_v2  ;;  %887 = vmatpush3.bf16.msra.mxu1 %v1014_v6  ;;  %v1024_v22 = vld [vmem:[#allocation8 + $0x20] sm:$0xff]   ;;  %v1025_v23 = vld [vmem:[#allocation8 + $0x18] sm:$0xff]   ;;  %v1026_v24 = vld [vmem:[#allocation8 + $0x10] sm:$0xff]   ;;  %p1142_p5 = scmp.lt.s32.totalorder %s1452_s19, %s1140_s3  ;;  %p1143_p3 = scmp.lt.s32.totalorder %s1141_s30, %s1135_s28 }
  0x6d   : > { %868 = vmatprep.subr.bf16.mxu0 %v1215_v0  ;;  %888 = vmatprep.subr.bf16.mxu1 %v1215_v0  ;;  %v806_v25 = vld [vmem:[%s1495_s2] ss:$0 sm:$0xff]  ;;  %v1027_v33 = vld [vmem:[#allocation8 + $0x8] sm:$0xff]   ;;  %v1028_v34 = vld [vmem:[#allocation8] sm:$0xff]   ;;  %p1138_p0 = pneg %p1137_p12 }
  0x6e   : > { %v815_v35 = vld [vmem:[%s1497_s4] ss:$0 sm:$0xff]  ;;  %p1144_p7 = por %p1143_p3, %p1142_p5 }
  0x6f   : > { %v824_v43 = vld [vmem:[%s1499_s6] ss:$0 sm:$0xff] }
  0x70   : > { %869 = vmatpush3.bf16.msra.mxu0 %v1007_v3  ;;  %889 = vmatpush3.bf16.msra.mxu1 %v1015_v8  ;;  %p1145_p9 = pnand %p1144_p7, %p1138_p0 }
  0x71   : > { %870 = vmatprep.subr.bf16.mxu0 %v1215_v0  ;;  %890 = vmatprep.subr.bf16.mxu1 %v1215_v0 }
  0x74   : > { %871 = vmatpush3.bf16.msra.mxu0 %v1008_v5  ;;  %891 = vmatpush3.bf16.msra.mxu1 %v1016_v10 }
  0x75   : > { %872 = vmatprep.subr.bf16.mxu0 %v1215_v0  ;;  %892 = vmatprep.subr.bf16.mxu1 %v1215_v0 }
  0x78   : > { %873 = vmatpush3.bf16.msra.mxu0 %v1009_v7  ;;  %893 = vmatpush3.bf16.msra.mxu1 %v1017_v12 }
  0x79   : > { %874 = vmatprep.subr.bf16.mxu0 %v1215_v0  ;;  %894 = vmatprep.subr.bf16.mxu1 %v1215_v0 }
  0x7c   : > { %875 = vmatpush3.bf16.msra.mxu0 %v1010_v9  ;;  %895 = vmatpush3.bf16.msra.mxu1 %v1018_v15 }
  0x7d   : > { %876 = vmatprep.subr.bf16.mxu0 %v1215_v0  ;;  %896 = vmatprep.subr.bf16.mxu1 %v1215_v0 }
  0x80   : > { %877 = vmatpush3.bf16.msra.mxu0 %v1011_v11  ;;  %897 = vmatpush3.bf16.msra.mxu1 %v1019_v17 }
  0x81   : > { %878 = vmatprep.subr.bf16.mxu0 %v1215_v0  ;;  %898 = vmatprep.subr.bf16.mxu1 %v1215_v0 }
  0x84   : > { %879 = vmatpush3.bf16.msra.mxu0 %v1012_v13  ;;  %899 = vmatpush3.bf16.msra.mxu1 %v1020_v18 }
  0x85   : > { %904 = vmatprep.subr.bf16.mxu0 %v1215_v0 }
  0x87   : > { %881 = vmatmul.mubr.bf16.vlgmr.msra.gmra.mxu0 %v357_v16 }
  0x88   : > { %920 = vmatprep.mubr.msk.bf16.mxu0 %vm1216_vm0, %v1215_v0  ;;  %905 = vmatpush3.bf16.msra.mxu0 %v1021_v19 }
  0x89   : > { %906 = vmatprep.subr.bf16.mxu0 %v1215_v0 }
  0x8c   : > { %907 = vmatpush3.bf16.msra.mxu0 %v1022_v20 }
  0x8d   : > { %908 = vmatprep.subr.bf16.mxu0 %v1215_v0 }
  0x90   : > { %909 = vmatpush3.bf16.msra.mxu0 %v1023_v21 }
  0x91   : > { %910 = vmatprep.subr.bf16.mxu0 %v1215_v0 }
  0x94   : > { %911 = vmatpush3.bf16.msra.mxu0 %v1024_v22 }
  0x95   : > { %912 = vmatprep.subr.bf16.mxu0 %v1215_v0 }
  0x98   : > { %913 = vmatpush3.bf16.msra.mxu0 %v1025_v23 }
  0x99   : > { %914 = vmatprep.subr.bf16.mxu0 %v1215_v0 }
  0x9c   : > { %915 = vmatpush3.bf16.msra.mxu0 %v1026_v24 }
  0x9d   : > { %916 = vmatprep.subr.bf16.mxu0 %v1215_v0 }
  0xa0   : > { %917 = vmatpush3.bf16.msra.mxu0 %v1027_v33 }
  0xa1   : > { %918 = vmatprep.subr.bf16.mxu0 %v1215_v0 }
  0xa4   : > { %919 = vmatpush3.bf16.msra.mxu0 %v1028_v34 }
 0x147   : > { %v446_v26 = vpop.f32.mrf.mxu0 }
 0x148   : > { %v447_v27 = vadd.f32 %v806_v25, %v446_v26 }
 0x149   : > { %v882_v28 = vpop.f32.mrf.mxu0 }
 0x14a   : > { %v452_v29 = vmax.f32 %v447_v27, 0.0 }
 0x14b   : > { %v449_v30 = vpop.f32.mrf.mxu0 }
 0x14c   : > { %v470_v31 = vpack.c.bf16 %v452_v29, %v452_v29 }
 0x14d   : > { %v883_v32 = vpop.f32.mrf.mxu0 }
 0x14e   : > { %901 = vmatmul.mubr.bf16.vlgmr.msra.gmra.mxu1 %v470_v31 }
 0x20e   : > { %v559_v36 = vpop.f32.mrf.mxu1 }
 0x20f   : > { %v560_v37 = vadd.f32 %v815_v35, %v559_v36 }
 0x210   : > { %v902_v38 = vpop.f32.mrf.mxu1 }
 0x211   : > { %v565_v39 = vmax.f32 %v560_v37, 0.0 }
 0x212   : > { %v562_v40 = vpop.f32.mrf.mxu1 }
 0x213   : > { %v583_v41 = vpack.c.bf16 %v565_v39, %v565_v39 }
 0x214   : > { %v903_v42 = vpop.f32.mrf.mxu1 }
 0x215   : > { %921 = vmatmul.mubr.bf16.vlgmr.msra.gmra.mxu0 %v583_v41 }
 0x2d5   : > { %v672_v44 = vpop.f32.mrf.mxu0 }
 0x2d6   : > { %v673_v45 = vadd.f32 %v824_v43, %v672_v44 }
 0x2d7   : > { %v922_v46 = vpop.f32.mrf.mxu0 }
 0x2d8   : > { %678 = vst [vmem:[%s337_s18] sm:$0xff] %v673_v45 }
 0x2d9   : > { %v675_v47 = vpop.f32.mrf.mxu0 }
 0x2da   : > { %1148 = shalt.err (!%p1145_p9)
}
 0x2db   : > { %s1149_s9 = scalar_lea.hbm %s1450_s21, 128  ;;  %s1153_s10 = scalar_lea.hbm %s1500_s7, 256 }
 0x2dc   : > { %p1150_p13 = scmp.ne.s32.totalorder %s1450_s21, %s1149_s9  ;;  %p1154_p11 = scmp.lt.s32.totalorder %s1450_s21, %s1500_s7 }
 0x2dd   : > { %p1155_p1 = scmp.lt.s32.totalorder %s1153_s10, %s1149_s9 }
 0x2de   : > { %p1151_p8 = pnand %p1150_p13, %p1522_p6 }
 0x2df   : > { %p1156_p2 = por %p1155_p1, %p1154_p11 }
 0x2e0   : > { %p1152_p10 = pneg %p1151_p8 }
 0x2e2   : > { %p1157_p4 = pnand %p1156_p2, %p1152_p10 }
 0x2e4   : > { %1160 = shalt.err (!%p1157_p4)
}
 0x2e5   : > { %938 = dma.vmem_to_hbm [thread:$0]  (%p1522_p6), %s1452_s19, 128, %s1450_s21, %s680_s1   ;;  %v923_v48 = vpop.f32.mrf.mxu0 }
 0x2e6 PF: > { %s705_s22 = sand.u32 1, %s1195_s24   ;;  %p1523_p12 = scmp.ne.s32.totalorder %s1508_s8, 0 }
 0x2e7   : > { %p1524_p0 = scmp.ge.s32.totalorder %s1207_s27, 2  ;;  %s706_s18 = scalar_lea.sflag [#allocation4], %s705_s22 }
 0x2e9   : > { %p955_p5 = pnand %p1524_p0, %p1523_p12 }
 0x2eb   : > { %p956_p3 = pneg %p955_p5 }
 0x2ed   : > { %1190 = dma.done.wait (%p956_p3), %s706_s18, 128  }
 0x2ee   : > { %1192 = vsyncadd (%p956_p3), %s706_s18, 4294967168  ;;  %p22_p7 = scmp.ge.s32.totalorder %s1338_s14, 4   ;;  %s1525_s24 = smov %s1199_s25 }
 0x2ef   : > { %s1526_s25 = smov %s1203_s26  ;;  %s1527_s26 = smov %s1348_s17 }
 0x2f0   : > { %s1528_s27 = smov %s1338_s14  ;;  %24 = sbr.rel (!%p22_p7) target bundleno = 10 (0xa), region = 105 }
 0x2f5   :  { %711 = vsyncpa [#allocation3], 1 }
 0x2f6   :  { %713 = vsyncpa [#allocation3 + $0x1], 1 }
 0x2f7   :  { %714 = vsyncpa [#allocation6], 1 }
 0x2f8   :  { %715 = vsyncpa [#allocation9], 1 }
 0x2f9   :  { %716 = vsyncpa [#allocation4], 1 }
 0x2fa   :  { %718 = vsyncpa [#allocation4 + $0x1], 1 }

</bundles_post_ra>
